<compile_context>
chip_gen: v7x
topology: tpu7x:2x2x1
jax: 0.10.0
libtpu: 0.0.40
codegen_flags: <defaults>
</compile_context>

<pallas_src>
import functools

import jax
import jax.numpy as jnp
from jax import lax
from jax.experimental import pallas as pl
from jax.experimental.pallas import tpu as pltpu


# ----------------------------- helpers (glue) -------------------------------

def get_same_padding(kernel_size: int) -> int:
    assert isinstance(kernel_size, int)
    assert kernel_size % 2 > 0, "kernel size should be odd number"
    return kernel_size // 2


def sub_filter_start_end(kernel_size: int, sub_kernel_size: int):
    center = kernel_size // 2
    dev = sub_kernel_size // 2
    start, end = center - dev, center + dev + 1
    assert end - start == sub_kernel_size
    return start, end


def _round_up(x, m):
    return (x + m - 1) // m * m


def _cdiv(a, b):
    return (a + b - 1) // b


_VMEM_LIMIT = None


def _vmem_limit_bytes():
    """Generation-aware scoped-VMEM limit (v7x: 64 MiB/TC, v5e/v6e: 128 MiB)."""
    global _VMEM_LIMIT
    if _VMEM_LIMIT is None:
        cap = 64 * 1024 * 1024  # conservative default (v7x per-TC)
        try:
            info = pltpu.get_tpu_info()
            cap = int(getattr(info, "vmem_capacity_bytes", cap)) or cap
        except Exception:
            pass
        # ~30% headroom, never below 32 MiB, never above 96 MiB.
        _VMEM_LIMIT = max(32 * 1024 * 1024, min(int(cap * 0.7), 96 * 1024 * 1024))
    return _VMEM_LIMIT


def _pick_ct_nchw(n, c, h, w, hp, wp, h_out, w_out, itemsize, budget):
    """Channel tile for the small-C NCHW path: vreg- and VMEM-padding-aware."""
    # acc (ct, h_out, w_out) f32 stays live in vregs across all unrolled taps.
    acc_vregs_per_chan = max(1, _cdiv(h_out, 8) * _cdiv(w_out, 128))
    ct = max(1, min(c, 24 // acc_vregs_per_chan))
    while c % ct:
        ct -= 1

    def block_bytes(ct_):
        # physical (8,128)-tiled sizes, BlockSpec double-buffers in/out blocks
        xin = ct_ * _round_up(h, 8) * _round_up(w, 128) * itemsize * 2
        out = ct_ * _round_up(h_out, 8) * _round_up(w_out, 128) * itemsize * 2
        scr = ct_ * _round_up(hp, 8) * _round_up(wp, 128) * 4
        return xin + out + scr

    while ct > 1 and block_bytes(ct) > budget:
        ct -= 1
        while c % ct:
            ct -= 1

    # Enough grid steps so each TensorCore (v7x has 2) can pipeline DMA.
    while n * (c // ct) < 8 and ct > 1:
        nxt = ct - 1
        while c % nxt:
            nxt -= 1
        ct = nxt
    return ct


def _pick_ct_nhwc(n, c, h, w, hp, wp, h_out, w_out, ks, itemsize, budget):
    """Channel tile (multiple of 128 lanes) for the channels-on-lanes path."""
    assert c % 128 == 0
    groups = c // 128
    divisors = [g for g in range(1, groups + 1) if groups % g == 0]
    cts = [128 * g for g in divisors]  # ascending

    def block_bytes(ct_):
        xin = h * _round_up(w, 8) * ct_ * itemsize * 2
        out = h_out * _round_up(w_out, 8) * ct_ * itemsize * 2
        scr = hp * _round_up(wp, 8) * ct_ * 4
        wgt = ks * _round_up(ks, 8) * ct_ * 4 * 2
        return xin + out + scr + wgt

    ct = cts[0]
    for cand in reversed(cts):
        if block_bytes(cand) <= budget:
            ct = cand
            break
    # Finer channel tiles if the grid would be too short to pipeline.
    idx = cts.index(ct)
    while n * (c // ct) < 8 and idx > 0:
        idx -= 1
        ct = cts[idx]
    return ct


def _pick_row_chunk(h_out, w_out, ct, vreg_budget=16):
    """Output-row chunk so the register-resident NHWC accumulator stays small."""
    per_row = max(1, _cdiv(w_out, 8) * _cdiv(ct, 128))
    return max(1, min(h_out, vreg_budget // per_row))


# ------------------------------ Pallas kernels -------------------------------

def _dw_nchw_kernel(x_ref, w_ref, o_ref, xp_ref, *, ks, stride, dilation, pad,
                    h_out, w_out):
    """Depthwise conv, NCHW block (tiny-C path).

    x_ref : (1, Ct, H, W)      o_ref : (1, Ct, H_out, W_out)
    w_ref : (Ct, ks, ks)       xp_ref: (Ct, H+2p, W+2p) f32 scratch
    """
    ct, h, w = x_ref.shape[1], x_ref.shape[2], x_ref.shape[3]
    wp = xp_ref.shape[2]

    # Border-only zeroing (interior is fully overwritten every step).
    if pad > 0:
        xp_ref[:, pl.ds(0, pad), :] = jnp.zeros((ct, pad, wp), jnp.float32)
        xp_ref[:, pl.ds(pad + h, pad), :] = jnp.zeros((ct, pad, wp), jnp.float32)
        xp_ref[:, pl.ds(pad, h), pl.ds(0, pad)] = jnp.zeros((ct, h, pad), jnp.float32)
        xp_ref[:, pl.ds(pad, h), pl.ds(pad + w, pad)] = jnp.zeros((ct, h, pad), jnp.float32)
    xp_ref[:, pl.ds(pad, h), pl.ds(pad, w)] = x_ref[0].astype(jnp.float32)

    wv = w_ref[...].astype(jnp.float32)                  # (Ct, ks, ks), one load

    acc = jnp.zeros((ct, h_out, w_out), jnp.float32)
    for i in range(ks):                                  # static, fully unrolled
        hi = i * dilation
        for j in range(ks):
            wj = j * dilation
            if stride == 1:
                win = xp_ref[:, pl.ds(hi, h_out), pl.ds(wj, w_out)]
            else:
                # TODO(synk): stride>1 strided lane-axis slice is untested;
                # validate lowering before relying on it.
                win = xp_ref[:, pl.ds(hi, h_out, stride),
                             pl.ds(wj, w_out, stride)]
            acc = acc + win * wv[:, i:i + 1, j:j + 1]

    o_ref[0] = acc.astype(o_ref.dtype)


def _dw_nhwc_kernel(x_ref, w_ref, o_ref, xp_ref, *, ks, stride, dilation, pad,
                    h_out, w_out, row_chunk):
    """Depthwise conv, channels-on-lanes (NHWC) block — lane-dense path.

    x_ref : (1, H, W, Ct)      o_ref : (1, H_out, W_out, Ct)
    w_ref : (ks, ks, Ct)       xp_ref: (H+2p, W+2p, Ct) f32 scratch
    """
    h, w, ct = x_ref.shape[1], x_ref.shape[2], x_ref.shape[3]
    wp = xp_ref.shape[1]

    # Border-only zeroing; all stores are full 128-lane width.
    if pad > 0:
        xp_ref[pl.ds(0, pad), :, :] = jnp.zeros((pad, wp, ct), jnp.float32)
        xp_ref[pl.ds(pad + h, pad), :, :] = jnp.zeros((pad, wp, ct), jnp.float32)
        xp_ref[pl.ds(pad, h), pl.ds(0, pad), :] = jnp.zeros((h, pad, ct), jnp.float32)
        xp_ref[pl.ds(pad, h), pl.ds(pad + w, pad), :] = jnp.zeros((h, pad, ct), jnp.float32)
    xp_ref[pl.ds(pad, h), pl.ds(pad, w), :] = x_ref[0].astype(jnp.float32)

    wv = w_ref[...].astype(jnp.float32)                  # (ks, ks, Ct), one load

    # Chunk output rows so the accumulator stays register-resident w/o spills.
    for r0 in range(0, h_out, row_chunk):
        r = min(row_chunk, h_out - r0)
        acc = jnp.zeros((r, w_out, ct), jnp.float32)
        for i in range(ks):
            hi = i * dilation
            for j in range(ks):
                wj = j * dilation
                if stride == 1:
                    win = xp_ref[pl.ds(r0 + hi, r), pl.ds(wj, w_out), :]
                else:
                    # Strides land on sublane / major axes only (no lane stride).
                    win = xp_ref[pl.ds(r0 * stride + hi, r, stride),
                                 pl.ds(wj, w_out, stride), :]
                acc = acc + win * wv[i, j]               # (Ct,) lane vector bcast
        o_ref[0, pl.ds(r0, r), :, :] = acc.astype(o_ref.dtype)


# ------------------------------ pallas wrappers -------------------------------

def _depthwise_conv_nchw(x, w_k, ks, stride, dilation, pad):
    n, c, h, w = x.shape
    hp, wp = h + 2 * pad, w + 2 * pad
    h_out = (hp - dilation * (ks - 1) - 1) // stride + 1
    w_out = (wp - dilation * (ks - 1) - 1) // stride + 1
    itemsize = jnp.dtype(x.dtype).itemsize

    vmem_limit = _vmem_limit_bytes()
    ct = _pick_ct_nchw(n, c, h, w, hp, wp, h_out, w_out, itemsize,
                       budget=vmem_limit // 3)

    kernel = functools.partial(_dw_nchw_kernel, ks=ks, stride=stride,
                               dilation=dilation, pad=pad,
                               h_out=h_out, w_out=w_out)

    flops = 2 * n * c * h_out * w_out * ks * ks
    bytes_accessed = int(itemsize * (x.size + w_k.size + n * c * h_out * w_out))

    return pl.pallas_call(
        kernel,
        out_shape=jax.ShapeDtypeStruct((n, c, h_out, w_out), x.dtype),
        grid_spec=pltpu.PrefetchScalarGridSpec(
            num_scalar_prefetch=0,
            grid=(n, c // ct),
            in_specs=[
                pl.BlockSpec((1, ct, h, w), lambda b, k: (b, k, 0, 0)),
                pl.BlockSpec((ct, ks, ks), lambda b, k: (k, 0, 0)),
            ],
            out_specs=pl.BlockSpec((1, ct, h_out, w_out),
                                   lambda b, k: (b, k, 0, 0)),
            scratch_shapes=[pltpu.VMEM((ct, hp, wp), jnp.float32)],
        ),
        compiler_params=pltpu.CompilerParams(
            dimension_semantics=("parallel", "parallel"),
            vmem_limit_bytes=vmem_limit),
        cost_estimate=pl.CostEstimate(
            flops=flops, transcendentals=0, bytes_accessed=bytes_accessed),
    )(x, w_k)


def _depthwise_conv_nhwc(x, w_k, ks, stride, dilation, pad):
    n, c, h, w = x.shape
    hp, wp = h + 2 * pad, w + 2 * pad
    h_out = (hp - dilation * (ks - 1) - 1) // stride + 1
    w_out = (wp - dilation * (ks - 1) - 1) // stride + 1
    itemsize = jnp.dtype(x.dtype).itemsize

    # Layout plumbing: channels on the 128-lane axis (lane-dense VALU + stores).
    x_nhwc = jnp.transpose(x, (0, 2, 3, 1))              # (N, H, W, C)
    w_hwc = jnp.transpose(w_k, (1, 2, 0))                # (ks, ks, C)

    vmem_limit = _vmem_limit_bytes()
    ct = _pick_ct_nhwc(n, c, h, w, hp, wp, h_out, w_out, ks, itemsize,
                       budget=vmem_limit // 3)
    row_chunk = _pick_row_chunk(h_out, w_out, ct)

    kernel = functools.partial(_dw_nhwc_kernel, ks=ks, stride=stride,
                               dilation=dilation, pad=pad,
                               h_out=h_out, w_out=w_out, row_chunk=row_chunk)

    flops = 2 * n * c * h_out * w_out * ks * ks
    bytes_accessed = int(itemsize * (x.size + w_k.size + n * c * h_out * w_out))

    y_nhwc = pl.pallas_call(
        kernel,
        out_shape=jax.ShapeDtypeStruct((n, h_out, w_out, c), x.dtype),
        grid_spec=pltpu.PrefetchScalarGridSpec(
            num_scalar_prefetch=0,
            grid=(n, c // ct),
            in_specs=[
                pl.BlockSpec((1, h, w, ct), lambda b, k: (b, 0, 0, k)),
                pl.BlockSpec((ks, ks, ct), lambda b, k: (0, 0, k)),
            ],
            out_specs=pl.BlockSpec((1, h_out, w_out, ct),
                                   lambda b, k: (b, 0, 0, k)),
            scratch_shapes=[pltpu.VMEM((hp, wp, ct), jnp.float32)],
        ),
        compiler_params=pltpu.CompilerParams(
            dimension_semantics=("parallel", "parallel"),
            vmem_limit_bytes=vmem_limit),
        cost_estimate=pl.CostEstimate(
            flops=flops, transcendentals=0, bytes_accessed=bytes_accessed),
    )(x_nhwc, w_hwc)

    return jnp.transpose(y_nhwc, (0, 3, 1, 2))           # back to NCHW


# ------------------------------ module wrapper ------------------------------

class DynamicSeparableConv2d:
    """JAX/Pallas re-implementation of the PyTorch DynamicSeparableConv2d forward."""

    def __init__(self, candidate_in_channels_list, candidate_out_channels_list,
                 candidate_kernel_size_list, stride=1, dilation=1, groups=1,
                 bias=False, *, key=None):
        # TODO(synk): bias=True path not implemented (reference default is False).
        assert not bias, "reference module is constructed with bias=False"
        self.candidate_in_channels_list = candidate_in_channels_list
        self.candidate_out_channels_list = candidate_out_channels_list
        self.candidate_kernel_size_list = candidate_kernel_size_list
        self.stride = stride
        self.dilation = dilation
        self.max_in = max(candidate_in_channels_list)
        self.max_ks = max(candidate_kernel_size_list)
        self.active_kernel_size = self.max_ks

        # nn.Conv2d(max_in, max_in, max_ks, groups=max_in).weight:
        # shape (max_in, 1, max_ks, max_ks).  Deterministic synthetic init.
        if key is None:
            key = jax.random.PRNGKey(0)
        fan_in = self.max_ks * self.max_ks
        bound = 1.0 / (fan_in ** 0.5)
        self.weight = jax.random.uniform(
            key, (self.max_in, 1, self.max_ks, self.max_ks),
            dtype=jnp.float32, minval=-bound, maxval=bound)

    def get_active_filter(self, in_channel, kernel_size):
        start, end = sub_filter_start_end(self.max_ks, kernel_size)
        return self.weight[:in_channel, :in_channel, start:end, start:end]

    def __call__(self, x, kernel_size=None):
        """x: (N, C, H, W) float32 (NCHW, matching PyTorch)."""
        if kernel_size is None:
            kernel_size = self.active_kernel_size
        n, c, h, w = x.shape
        assert c <= self.max_in
        ks = int(kernel_size)
        s, d = self.stride, self.dilation
        p = get_same_padding(ks)

        filters = self.get_active_filter(c, ks)          # (C, 1, ks, ks)
        w_k = filters[:, 0, :, :]                        # (C, ks, ks)

        if c % 128 == 0:
            return _depthwise_conv_nhwc(x, w_k, ks, s, d, p)
        return _depthwise_conv_nchw(x, w_k, ks, s, d, p)


# --------------------------------- main --------------------------------------

def _reference_depthwise(x, filters, stride, padding, dilation):
    c = x.shape[1]
    return lax.conv_general_dilated(
        x, filters,
        window_strides=(stride, stride),
        padding=[(padding, padding), (padding, padding)],
        rhs_dilation=(dilation, dilation),
        feature_group_count=c,
        dimension_numbers=("NCHW", "OIHW", "NCHW"))


def _check(mod, x, ks):
    y = mod(x, kernel_size=ks)
    jax.block_until_ready(y)
    filters = mod.get_active_filter(x.shape[1], ks)
    y_ref = _reference_depthwise(x, filters, mod.stride,
                                 get_same_padding(ks), mod.dilation)
    if y.shape != y_ref.shape:
        return False
    return bool(jnp.allclose(y, y_ref, atol=1e-5, rtol=1e-5))


if __name__ == "__main__":
    key = jax.random.PRNGKey(0)
    kx, kw, kx2, kw2 = jax.random.split(key, 4)

    ok = True

    # Tiny-C demo (NCHW path), matching the module's small example shapes.
    mod = DynamicSeparableConv2d(
        candidate_in_channels_list=[2, 4],
        candidate_out_channels_list=[2, 4],
        candidate_kernel_size_list=[3, 5, 7],
        stride=1, dilation=1, bias=False, key=kw)
    x = jax.random.normal(kx, (2, 4, 16, 16), dtype=jnp.float32)
    for ks in (3, 5, 7):
        ok = ok and _check(mod, x, ks)

    # Lane-dense channels-on-lanes path (C multiple of 128), still small.
    mod2 = DynamicSeparableConv2d(
        candidate_in_channels_list=[64, 128],
        candidate_out_channels_list=[64, 128],
        candidate_kernel_size_list=[3, 5],
        stride=1, dilation=1, bias=False, key=kw2)
    x2 = jax.random.normal(kx2, (2, 128, 8, 8), dtype=jnp.float32)
    for ks in (3, 5):
        ok = ok and _check(mod2, x2, ks)

    print("KERNEL_OK" if ok else "KERNEL_MISMATCH")
</pallas_src>

<mosaic_0001>
module attributes {stable_mosaic.version = 11 : i64} {
  func.func @_dw_nchw_kernel(%arg0: i32, %arg1: i32, %arg2: memref<1x1x16x16xf32, #tpu.memory_space<vmem>>, %arg3: memref<1x3x3xf32, #tpu.memory_space<vmem>>, %arg4: memref<1x1x16x16xf32, #tpu.memory_space<vmem>>, %arg5: memref<1x18x18xf32, #tpu.memory_space<vmem>>) attributes {dimension_semantics = [#tpu.dimension_semantics<parallel>, #tpu.dimension_semantics<parallel>], iteration_bounds = array<i64: 2, 4>, scalar_prefetch = 0 : i64, scratch_operands = 1 : i64, tpu.core_type = #tpu.core_type<tc>, window_params = [{transform_indices = @transform_0, window_bounds = array<i64: 1, 1, 16, 16>}, {transform_indices = @transform_1, window_bounds = array<i64: 1, 3, 3>}, {transform_indices = @transform_2, window_bounds = array<i64: 1, 1, 16, 16>}]} {
    %cst = arith.constant 0.000000e+00 : f32
    %0 = vector.broadcast %cst : f32 to vector<1x1x18xf32>
    %c0 = arith.constant 0 : index
    %c0_0 = arith.constant 0 : index
    %c0_1 = arith.constant 0 : index
    %1 = vector.load %arg5[%c0, %c0_0, %c0_1] : memref<1x18x18xf32, #tpu.memory_space<vmem>>, vector<1x1x18xf32>
    tpu.vector_store %arg5[%c0, %c0_0, %c0_1], %0 {strides = array<i32>} : memref<1x18x18xf32, #tpu.memory_space<vmem>>, vector<1x1x18xf32>,
    %cst_2 = arith.constant 0.000000e+00 : f32
    %2 = vector.broadcast %cst_2 : f32 to vector<1x1x18xf32>
    %c0_3 = arith.constant 0 : index
    %c17 = arith.constant 17 : index
    %c0_4 = arith.constant 0 : index
    %3 = vector.load %arg5[%c0_3, %c17, %c0_4] : memref<1x18x18xf32, #tpu.memory_space<vmem>>, vector<1x1x18xf32>
    tpu.vector_store %arg5[%c0_3, %c17, %c0_4], %2 {strides = array<i32>} : memref<1x18x18xf32, #tpu.memory_space<vmem>>, vector<1x1x18xf32>,
    %cst_5 = arith.constant 0.000000e+00 : f32
    %4 = vector.broadcast %cst_5 : f32 to vector<1x16x1xf32>
    %c0_6 = arith.constant 0 : index
    %c1 = arith.constant 1 : index
    %c0_7 = arith.constant 0 : index
    %5 = vector.load %arg5[%c0_6, %c1, %c0_7] : memref<1x18x18xf32, #tpu.memory_space<vmem>>, vector<1x16x1xf32>
    tpu.vector_store %arg5[%c0_6, %c1, %c0_7], %4 {strides = array<i32>} : memref<1x18x18xf32, #tpu.memory_space<vmem>>, vector<1x16x1xf32>,
    %cst_8 = arith.constant 0.000000e+00 : f32
    %6 = vector.broadcast %cst_8 : f32 to vector<1x16x1xf32>
    %c0_9 = arith.constant 0 : index
    %c1_10 = arith.constant 1 : index
    %c17_11 = arith.constant 17 : index
    %7 = vector.load %arg5[%c0_9, %c1_10, %c17_11] : memref<1x18x18xf32, #tpu.memory_space<vmem>>, vector<1x16x1xf32>
    tpu.vector_store %arg5[%c0_9, %c1_10, %c17_11], %6 {strides = array<i32>} : memref<1x18x18xf32, #tpu.memory_space<vmem>>, vector<1x16x1xf32>,
    %c0_12 = arith.constant 0 : index
    %c0_13 = arith.constant 0 : index
    %c0_14 = arith.constant 0 : index
    %c0_15 = arith.constant 0 : index
    %8 = vector.load %arg2[%c0_12, %c0_13, %c0_14, %c0_15] : memref<1x1x16x16xf32, #tpu.memory_space<vmem>>, vector<1x1x16x16xf32>
    %9 = vector.shape_cast %8 : vector<1x1x16x16xf32> to vector<1x16x16xf32>
    %c0_16 = arith.constant 0 : index
    %c1_17 = arith.constant 1 : index
    %c1_18 = arith.constant 1 : index
    %10 = vector.load %arg5[%c0_16, %c1_17, %c1_18] : memref<1x18x18xf32, #tpu.memory_space<vmem>>, vector<1x16x16xf32>
    tpu.vector_store %arg5[%c0_16, %c1_17, %c1_18], %9 {strides = array<i32>} : memref<1x18x18xf32, #tpu.memory_space<vmem>>, vector<1x16x16xf32>,
    %c0_19 = arith.constant 0 : index
    %c0_20 = arith.constant 0 : index
    %c0_21 = arith.constant 0 : index
    %11 = vector.load %arg3[%c0_19, %c0_20, %c0_21] : memref<1x3x3xf32, #tpu.memory_space<vmem>>, vector<1x3x3xf32>
    %cst_22 = arith.constant 0.000000e+00 : f32
    %12 = vector.broadcast %cst_22 : f32 to vector<1x16x16xf32>
    %c0_23 = arith.constant 0 : index
    %c0_24 = arith.constant 0 : index
    %c0_25 = arith.constant 0 : index
    %13 = vector.load %arg5[%c0_23, %c0_24, %c0_25] : memref<1x18x18xf32, #tpu.memory_space<vmem>>, vector<1x16x16xf32>
    %14 = vector.extract_strided_slice %11 {offsets = [0, 0, 0], sizes = [1, 1, 1], strides = [1, 1, 1]} : vector<1x3x3xf32> to vector<1x1x1xf32>
    %15 = vector.broadcast %14 : vector<1x1x1xf32> to vector<1x16x16xf32>
    %16 = arith.mulf %13, %15 : vector<1x16x16xf32>
    %17 = arith.addf %12, %16 : vector<1x16x16xf32>
    %c0_26 = arith.constant 0 : index
    %c0_27 = arith.constant 0 : index
    %c1_28 = arith.constant 1 : index
    %18 = vector.load %arg5[%c0_26, %c0_27, %c1_28] : memref<1x18x18xf32, #tpu.memory_space<vmem>>, vector<1x16x16xf32>
    %19 = vector.extract_strided_slice %11 {offsets = [0, 0, 1], sizes = [1, 1, 1], strides = [1, 1, 1]} : vector<1x3x3xf32> to vector<1x1x1xf32>
    %20 = vector.broadcast %19 : vector<1x1x1xf32> to vector<1x16x16xf32>
    %21 = arith.mulf %18, %20 : vector<1x16x16xf32>
    %22 = arith.addf %17, %21 : vector<1x16x16xf32>
    %c0_29 = arith.constant 0 : index
    %c0_30 = arith.constant 0 : index
    %c2 = arith.constant 2 : index
    %23 = vector.load %arg5[%c0_29, %c0_30, %c2] : memref<1x18x18xf32, #tpu.memory_space<vmem>>, vector<1x16x16xf32>
    %24 = vector.extract_strided_slice %11 {offsets = [0, 0, 2], sizes = [1, 1, 1], strides = [1, 1, 1]} : vector<1x3x3xf32> to vector<1x1x1xf32>
    %25 = vector.broadcast %24 : vector<1x1x1xf32> to vector<1x16x16xf32>
    %26 = arith.mulf %23, %25 : vector<1x16x16xf32>
    %27 = arith.addf %22, %26 : vector<1x16x16xf32>
    %c0_31 = arith.constant 0 : index
    %c1_32 = arith.constant 1 : index
    %c0_33 = arith.constant 0 : index
    %28 = vector.load %arg5[%c0_31, %c1_32, %c0_33] : memref<1x18x18xf32, #tpu.memory_space<vmem>>, vector<1x16x16xf32>
    %29 = vector.extract_strided_slice %11 {offsets = [0, 1, 0], sizes = [1, 1, 1], strides = [1, 1, 1]} : vector<1x3x3xf32> to vector<1x1x1xf32>
    %30 = vector.broadcast %29 : vector<1x1x1xf32> to vector<1x16x16xf32>
    %31 = arith.mulf %28, %30 : vector<1x16x16xf32>
    %32 = arith.addf %27, %31 : vector<1x16x16xf32>
    %c0_34 = arith.constant 0 : index
    %c1_35 = arith.constant 1 : index
    %c1_36 = arith.constant 1 : index
    %33 = vector.load %arg5[%c0_34, %c1_35, %c1_36] : memref<1x18x18xf32, #tpu.memory_space<vmem>>, vector<1x16x16xf32>
    %34 = vector.extract_strided_slice %11 {offsets = [0, 1, 1], sizes = [1, 1, 1], strides = [1, 1, 1]} : vector<1x3x3xf32> to vector<1x1x1xf32>
    %35 = vector.broadcast %34 : vector<1x1x1xf32> to vector<1x16x16xf32>
    %36 = arith.mulf %33, %35 : vector<1x16x16xf32>
    %37 = arith.addf %32, %36 : vector<1x16x16xf32>
    %c0_37 = arith.constant 0 : index
    %c1_38 = arith.constant 1 : index
    %c2_39 = arith.constant 2 : index
    %38 = vector.load %arg5[%c0_37, %c1_38, %c2_39] : memref<1x18x18xf32, #tpu.memory_space<vmem>>, vector<1x16x16xf32>
    %39 = vector.extract_strided_slice %11 {offsets = [0, 1, 2], sizes = [1, 1, 1], strides = [1, 1, 1]} : vector<1x3x3xf32> to vector<1x1x1xf32>
    %40 = vector.broadcast %39 : vector<1x1x1xf32> to vector<1x16x16xf32>
    %41 = arith.mulf %38, %40 : vector<1x16x16xf32>
    %42 = arith.addf %37, %41 : vector<1x16x16xf32>
    %c0_40 = arith.constant 0 : index
    %c2_41 = arith.constant 2 : index
    %c0_42 = arith.constant 0 : index
    %43 = vector.load %arg5[%c0_40, %c2_41, %c0_42] : memref<1x18x18xf32, #tpu.memory_space<vmem>>, vector<1x16x16xf32>
    %44 = vector.extract_strided_slice %11 {offsets = [0, 2, 0], sizes = [1, 1, 1], strides = [1, 1, 1]} : vector<1x3x3xf32> to vector<1x1x1xf32>
    %45 = vector.broadcast %44 : vector<1x1x1xf32> to vector<1x16x16xf32>
    %46 = arith.mulf %43, %45 : vector<1x16x16xf32>
    %47 = arith.addf %42, %46 : vector<1x16x16xf32>
    %c0_43 = arith.constant 0 : index
    %c2_44 = arith.constant 2 : index
    %c1_45 = arith.constant 1 : index
    %48 = vector.load %arg5[%c0_43, %c2_44, %c1_45] : memref<1x18x18xf32, #tpu.memory_space<vmem>>, vector<1x16x16xf32>
    %49 = vector.extract_strided_slice %11 {offsets = [0, 2, 1], sizes = [1, 1, 1], strides = [1, 1, 1]} : vector<1x3x3xf32> to vector<1x1x1xf32>
    %50 = vector.broadcast %49 : vector<1x1x1xf32> to vector<1x16x16xf32>
    %51 = arith.mulf %48, %50 : vector<1x16x16xf32>
    %52 = arith.addf %47, %51 : vector<1x16x16xf32>
    %c0_46 = arith.constant 0 : index
    %c2_47 = arith.constant 2 : index
    %c2_48 = arith.constant 2 : index
    %53 = vector.load %arg5[%c0_46, %c2_47, %c2_48] : memref<1x18x18xf32, #tpu.memory_space<vmem>>, vector<1x16x16xf32>
    %54 = vector.extract_strided_slice %11 {offsets = [0, 2, 2], sizes = [1, 1, 1], strides = [1, 1, 1]} : vector<1x3x3xf32> to vector<1x1x1xf32>
    %55 = vector.broadcast %54 : vector<1x1x1xf32> to vector<1x16x16xf32>
    %56 = arith.mulf %53, %55 : vector<1x16x16xf32>
    %57 = arith.addf %52, %56 : vector<1x16x16xf32>
    %c0_49 = arith.constant 0 : index
    %c0_50 = arith.constant 0 : index
    %c0_51 = arith.constant 0 : index
    %c0_52 = arith.constant 0 : index
    %58 = vector.load %arg4[%c0_49, %c0_50, %c0_51, %c0_52] : memref<1x1x16x16xf32, #tpu.memory_space<vmem>>, vector<1x1x16x16xf32>
    %59 = vector.shape_cast %58 : vector<1x1x16x16xf32> to vector<1x16x16xf32>
    %60 = vector.shape_cast %57 : vector<1x16x16xf32> to vector<1x1x16x16xf32>
    tpu.vector_store %arg4[%c0_49, %c0_50, %c0_51, %c0_52], %60 {strides = array<i32>} : memref<1x1x16x16xf32, #tpu.memory_space<vmem>>, vector<1x1x16x16xf32>,
    return
  }
  func.func @transform_0(%arg0: i32, %arg1: i32) -> (i32, i32, i32, i32) {
    %c0_i32 = arith.constant 0 : i32
    %c0_i32_0 = arith.constant 0 : i32
    %c0_i32_1 = arith.constant 0 : i32
    return %arg0, %arg1, %c0_i32, %c0_i32_0 : i32, i32, i32, i32
  }
  func.func @transform_1(%arg0: i32, %arg1: i32) -> (i32, i32, i32) {
    %c0_i32 = arith.constant 0 : i32
    %c0_i32_0 = arith.constant 0 : i32
    %c0_i32_1 = arith.constant 0 : i32
    return %arg1, %c0_i32, %c0_i32_0 : i32, i32, i32
  }
  func.func @transform_2(%arg0: i32, %arg1: i32) -> (i32, i32, i32, i32) {
    %c0_i32 = arith.constant 0 : i32
    %c0_i32_0 = arith.constant 0 : i32
    %c0_i32_1 = arith.constant 0 : i32
    return %arg0, %arg1, %c0_i32, %c0_i32_0 : i32, i32, i32, i32
  }
}

</mosaic_0001>

<bundles_post_ra>
// kernel: tpu_custom_call.1
= control target key start
LH: loop header
LB: loop body
LE: loop exit
PB: predicated region body
PF: predicated region fallthrough
CT: control target
= control target key end

     0   :  { %7 = vsyncpa [#allocation4], 0  ;;  %s979_s0 = inlined_call_operand.hbm [shape: f32[2,4,16,16], index: 0, kind: input, shape index: {}]   ;;  %s980_s1 = inlined_call_operand.vmem [shape: f32[4,3,3], index: 1, kind: input, shape index: {}]   ;;  %s981_s2 = inlined_call_operand.hbm [shape: f32[2,4,16,16], index: 2, kind: output, shape index: {}]  }
   0x1   :  { %9 = vsyncpa [#allocation4 + $0x1], 0 }
   0x2   :  { %10 = vsyncpa [#allocation5], 0 }
   0x3   :  { %12 = vsyncpa [#allocation5 + $0x1], 0  ;;  %s750_s9 = smov 0   ;;  %s752_s10 = smov 0  }
   0x4   :  { %s754_s11 = smov 0   ;;  %s756_s12 = smov 0  }
   0x5   :  { %s758_s13 = smov 0   ;;  %s760_s14 = smov 0  }
   0x6   :  { %s762_s15 = smov 0   ;;  %s764_s16 = smov 0  }
   0x7 LB: > { %s473_s17 = sadd.s32 4294967295, %s723_s16   ;;  %s474_s18 = sadd.s32 4294967294, %s723_s16   ;;  %s723_s16 = sphi %s764_s16, %s18_s16   ;;  %s719_s15 = sphi %s762_s15, %s996_s15   ;;  %s715_s14 = sphi %s760_s14, %s995_s14   ;;  %s711_s13 = sphi %s758_s13, %s994_s13   ;;  %s707_s12 = sphi %s756_s12, %s993_s12   ;;  %s703_s11 = sphi %s754_s11, %s992_s11   ;;  %s699_s10 = sphi %s752_s10, %s991_s10   ;;  %s695_s9 = sphi %s750_s9, %s990_s9  }
   0x8   : > { %s27_s19 = sadd.s32 1, %s715_s14  ;;  %s30_s20 = sadd.s32 1, %s719_s15 }
   0x9   : > { %p28_p0 = scmp.ge.s32.totalorder %s27_s19, 4  ;;  %s39_s21 = sadd.s32 1, %s703_s11 }
   0xa   : > { %p46_p1 = scmp.ne.s32.totalorder %s703_s11, %s699_s10  ;;  %p47_p2 = scmp.eq.s32.totalorder %s723_s16, 0 }
   0xb   : > { %s998_s19 = smov (%p28_p0, %s27_s19), 0  ;;  %s1000_s20 = smov (!%p28_p0, %s30_s20), %s719_s15 }
   0xc   : > { %s35_s22 = ssub.s32 %s715_s14, %s998_s19  ;;  %p803_p3 = por %p47_p2, %p46_p1 }
   0xd   : > { %p32_p4 = scmp.ge.s32.totalorder %s1000_s20, 2  ;;  %p52_p5 = scmp.ne.s32.totalorder %s699_s10, %s695_s9 }
   0xe   : > { %p53_p6 = scmp.eq.s32.totalorder %s473_s17, 0  ;;  %p104_p7 = scmp.eq.s32.totalorder %s473_s17, 7 }
   0xf   : > { %s1002_s20 = smov (%p32_p4, %s1000_s20), 0  ;;  %p110_p10 = scmp.eq.s32.totalorder %s474_s18, 7 }
  0x10   : > { %p811_p8 = por %p53_p6, %p52_p5  ;;  %p815_p9 = por %p104_p7, %p46_p1 }
  0x11   : > { %s34_s26 = ssub.s32 %s719_s15, %s1002_s20  ;;  %p821_p12 = por %p110_p10, %p52_p5 }
  0x12   : > { %s985_s25 = scalar_select %p815_p9, 1, 0 }
  0x13   : > { %s36_s27 = sor.u32 %s35_s22, %s34_s26  ;;  %p521_p13 = scmp.lt.s32.totalorder %s723_s16, 8 }
  0x14   : > { %p37_p11 = scmp.eq.s32.totalorder %s36_s27, 0  ;;  %s130_s29 = sand.u32 1, %s703_s11  }
  0x15   : > { %s986_s28 = scalar_select %p821_p12, 1, 0 }
  0x16   : > { %s828_s30 = scalar_select %p37_p11, %s703_s11, %s39_s21  }
  0x17   : > { %s477_s3 = sshll.u32 %s130_s29, 4  ;;  %s478_s4 = sshll.u32 %s715_s14, 1 }
  0x18   : > { %s479_s5 = sshll.u32 %s719_s15, 3  ;;  %s134_s6 = scalar_lea.vmem [#allocation3], %s477_s3 }
  0x19   : > { %s143_s7 = sshll.u32 %s134_s6, 4  ;;  %s140_s8 = sadd.s32 %s479_s5, %s478_s4  ;;  %s832_s7 = int_to_ptr.vmem [resolvable:$true] %s143_s7 }
  0x1a   : > { %s480_s17 = sshll.u32 %s140_s8, 7  ;;  %p836_p0 = pnand %p521_p13, %p803_p3 }
  0x1b   : > { %s843_s21 = scalar_lea.hbm %s979_s0, %s480_s17  ;;  %s845_s27 = scalar_lea.sflag [#allocation4], %s130_s29 }
  0x1c   : > { %s595_s3 = scalar_lea.hbm %s843_s21, 256  ;;  %p597_p2 = pneg %p836_p0 }
  0x1d   : > { %p596_p1 = scmp.ne.s32.totalorder %s843_s21, %s595_s3  ;;  %s600_s5 = scalar_lea.hbm %s979_s0, 2048 }
  0x1e   : > { %p601_p5 = scmp.lt.u32.totalorder %s843_s21, %s979_s0  ;;  %p602_p6 = scmp.lt.u32.totalorder %s600_s5, %s595_s3 }
  0x1f   : > { %p598_p3 = pnand %p597_p2, %p596_p1  ;;  %p604_p10 = scmp.lt.u32.totalorder %s595_s3, %s843_s21 }
  0x20   : > { %p603_p7 = por %p602_p6, %p601_p5 }
  0x21   : > { %p599_p4 = pneg %p598_p3 }
  0x22   : > { %p605_p11 = por %p604_p10, %p603_p7 }
  0x24   : > { %p606_p13 = pnand %p605_p11, %p599_p4 }
  0x26   : > { %609 = shalt.err (!%p606_p13)
}
  0x27   : > { %s610_s29 = scalar_lea.vmem %s832_s7, 256  ;;  %s725_s17 = smov [#allocation3]  }
  0x28   : > { %p611_p1 = scmp.ne.s32.totalorder %s832_s7, %s610_s29  ;;  %s615_s22 = sshll.u32 %s725_s17, 4  ;;  %s616_s22 = int_to_ptr.vmem [resolvable:$false] %s615_s22 }
  0x29   : > { %s617_s26 = scalar_lea.vmem %s616_s22, 512  ;;  %p618_p9 = scmp.lt.s32.totalorder %s832_s7, %s616_s22 }
  0x2a   : > { %p613_p3 = pnand %p611_p1, %p597_p2  ;;  %p619_p5 = scmp.lt.s32.totalorder %s617_s26, %s610_s29 }
  0x2c   : > { %p614_p12 = pneg %p613_p3  ;;  %p620_p6 = por %p619_p5, %p618_p9 }
  0x2e   : > { %p621_p7 = pnand %p620_p6, %p614_p12 }
  0x30   : > { %624 = shalt.err (!%p621_p7)
}
  0x31   : > { %s726_s3 = smov 128   ;;  %s727_s23 = smov 8  }
  0x32   : > { %516 = dma.hbm_to_vmem [thread:$0]  (!%p836_p0), %s843_s21, 256, %s832_s7, %s845_s27, %s726_s3, %s726_s3, %s727_s23  }
  0x33   : > { %p481_p2 = scmp.ge.s32.totalorder %s723_s16, 1  ;;  %p158_p4 = scmp.lt.s32.totalorder %s723_s16, 9 }
  0x35   : > { %p159_p10 = pnand %p481_p2, %p158_p4 }
  0x36   : > { %s876_s4 = sand.u32 (!%p159_p10), 1, %s699_s10  }
  0x37   : > { %162 = sbr.rel (%p159_p10) target bundleno = 390 (0x186), region = 28  ;;  %s482_s5 = sshll.u32 (!%p159_p10), %s876_s4, 4 }
  0x38   : > { %s165_s6 = scalar_lea.sflag (!%p159_p10), [#allocation4], %s876_s4  ;;  %s882_s8 = scalar_lea.vmem (!%p159_p10), [#allocation3], %s482_s5 }
  0x3e   : > { %686 = dma.done.wait (%p811_p8), %s165_s6, 256  }
  0x3f   : > { %688 = vsyncadd (%p811_p8), %s165_s6, 4294967040  ;;  %p193_p9 = scmp.lt.s32.totalorder %s707_s12, 3  ;;  %vm200_vm0 = vcmask 7168   ;;  %vm203_vm1 = vcmask 146568   ;;  %v728_v0 = vmov 0.0   ;;  %s729_s24 = smov 127  }
  0x40   : > { %202 = vst.msk [vmem:[#allocation2 + $0x9] sm:$0xff] %vm200_vm0, %v728_v0  ;;  %201 = vst.msk [vmem:[#allocation2 + $0x1] sm:$0xff] %vm200_vm0, %v728_v0  ;;  %vm197_vm2 = vcmask 139264   ;;  %s730_s17 = smov 126   ;;  %v206_v4 = vld [vmem:[%s882_s8] sm:$0xff]  ;;  %v207_v5 = vld [vmem:[%s882_s8 + $0x8] sm:$0xff] }
  0x41   : > { %s194_s7 = scalar_select %p193_p9, %s707_s12, 3  ;;  %205 = vst.msk [vmem:[#allocation2 + $0x9] sm:$0xff] %vm203_vm1, %v728_v0  ;;  %204 = vst.msk [vmem:[#allocation2 + $0x1] sm:$0xff] %vm203_vm1, %v728_v0  ;;  %vm216_vm3 = vcmask 138248   ;;  %vm352_vm4 = vcmask 130048  }
  0x42   : > { %198 = vst.msk [vmem:[#allocation2] sm:$0x1] %vm197_vm2, %v728_v0  ;;  %199 = vst.msk [vmem:[#allocation2 + $0x11] sm:$0x1] %vm197_vm2, %v728_v0  ;;  %s731_s22 = smov 1   ;;  %p988_p12 = scmp.ne.s32.totalorder %s985_s25, 0 }
  0x43   : > { %s484_s18 = sshll.u32 %s194_s7, 2 }
  0x44   : > { %s196_s29 = scalar_lea.vmem %s980_s1, %s484_s18 }
  0x45   : > { %v219_v1 = vld [vmem:[%s196_s29] sm:$0x7]  ;;  %s486_s29 = sshll.u32 %s707_s12, 1 }
  0x46   : > { %230 = vrot.lane.b32.xlu0 %v219_v1, %s729_s24  ;;  %v266_v2 = vrot.slane %v219_v1, 1  ;;  %491 = vpush %v219_v1  ;;  %v310_v3 = vrot.slane %v219_v1, 2 }
  0x48   : > { %274 = vrot.lane.b32.xlu1 %v266_v2, %s729_s24 }
  0x4a   : > { %247 = vrot.lane.b32.xlu0 %v219_v1, %s730_s17 }
  0x4c   : > { %291 = vrot.lane.b32.xlu1 %v266_v2, %s730_s17 }
  0x4e   : > { %318 = vrot.lane.b32.xlu0 %v310_v3, %s729_s24 }
  0x50   : > { %335 = vrot.lane.b32.xlu1 %v310_v3, %s730_s17 }
  0x52   : > { %210 = vrot.lane.b32.xlu0 %v206_v4, %s731_s22 }
  0x54   : > { %212 = vrot.lane.b32.xlu1 %v207_v5, %s731_s22  ;;  %s192_s22 = scalar_lea.vmem [#allocation6], %s482_s5  ;;  %s356_s5 = scalar_lea.sflag [#allocation5], %s876_s4 }
  0x77   : > { %s901_s26 = spop %491 }
  0x78   : > { %v224_v44 = vstv %s901_s26  ;;  %s371_s26 = sshll.u32 %s192_s22, 4  ;;  %s920_s26 = int_to_ptr.vmem [resolvable:$true] %s371_s26 }
  0xb8   : > { %v231_v6 = vpop.permute.xlu0 %230 }
  0xb9   : > { %493 = vpush %v231_v6 }
  0xba   : > { %v275_v7 = vpop.permute.xlu1 %274 }
  0xbc   : > { %v248_v8 = vpop.permute.xlu0 %247 }
  0xbd   : > { %495 = vpush %v248_v8 }
  0xbe   : > { %497 = vpush %v266_v2  ;;  %v292_v9 = vpop.permute.xlu1 %291 }
  0xbf   : > { %499 = vpush %v275_v7 }
  0xc0   : > { %501 = vpush %v292_v9  ;;  %v319_v10 = vpop.permute.xlu0 %318 }
  0xc1   : > { %503 = vpush %v310_v3 }
  0xc2   : > { %505 = vpush %v319_v10  ;;  %v336_v11 = vpop.permute.xlu1 %335 }
  0xc3   : > { %507 = vpush %v336_v11 }
  0xc4   : > { %v211_v12 = vpop.permute.xlu0 %210 }
  0xc5   : > { %217 = vst.msk [vmem:[#allocation2 + $0x1] sm:$0xff] %vm216_vm3, %v211_v12 }
  0xc6   : > { %v213_v13 = vpop.permute.xlu1 %212 }
  0xc7   : > { %218 = vst.msk [vmem:[#allocation2 + $0x9] sm:$0xff] %vm216_vm3, %v213_v13 }
  0xcc   : > { %v220_v14 = vld [vmem:[#allocation2] sm:$0xff] }
  0xcd   : > { %v264_v22 = vld [vmem:[#allocation2 + $0x1] sm:$0xff]  ;;  %v226_v47 = vmul.f32 %v224_v44, %v220_v14 }
  0xce   : > { %v221_v15 = vld [vmem:[#allocation2 + $0x8] sm:$0xff] }
  0xcf   : > { %v265_v23 = vld [vmem:[#allocation2 + $0x9] sm:$0xff]  ;;  %v227_v48 = vmul.f32 %v224_v44, %v221_v15 }
  0xd0   : > { %v308_v28 = vld [vmem:[#allocation2 + $0x2] sm:$0xff]  ;;  %v309_v29 = vld [vmem:[#allocation2 + $0xa] sm:$0xff] }
  0xea   : > { %s494_s3 = spop %493 }
  0xeb   : > { %v233_v16 = vstv %s494_s3 }
  0xec   : > { %v235_v17 = vmul.f32 %v233_v16, %v220_v14  ;;  %v236_v18 = vmul.f32 %v233_v16, %v221_v15 }
  0xee   : > { %s496_s23 = spop %495  ;;  %241 = vrot.lane.b32.xlu1 %v236_v18, %s729_s24  ;;  %239 = vrot.lane.b32.xlu0 %v235_v17, %s729_s24 }
  0xef   : > { %v250_v19 = vstv %s496_s23  ;;  %s498_s6 = spop %497 }
  0xf0   : > { %v252_v20 = vmul.f32 %v250_v19, %v220_v14  ;;  %v253_v21 = vmul.f32 %v250_v19, %v221_v15  ;;  %v268_v24 = vstv %s498_s6  ;;  %s500_s8 = spop %499  ;;  %s625_s6 = scalar_lea.vmem %s920_s26, 256 }
  0xf1   : > { %v270_v25 = vmul.f32 %v268_v24, %v264_v22  ;;  %v271_v26 = vmul.f32 %v268_v24, %v265_v23  ;;  %v277_v27 = vstv %s500_s8  ;;  %s502_s7 = spop %501  ;;  %p626_p8 = scmp.ne.s32.totalorder %s920_s26, %s625_s6 }
  0xf2   : > { %s504_s18 = spop %503  ;;  %258 = vrot.lane.b32.xlu1 %v253_v21, %s730_s17  ;;  %256 = vrot.lane.b32.xlu0 %v252_v20, %s730_s17  ;;  %v279_v31 = vmul.f32 %v277_v27, %v264_v22  ;;  %v280_v32 = vmul.f32 %v277_v27, %v265_v23  ;;  %v294_v35 = vstv %s502_s7  ;;  %s732_s8 = smov [#allocation6]  }
  0xf3   : > { %v312_v30 = vstv %s504_s18  ;;  %s506_s21 = spop %505  ;;  %v296_v36 = vmul.f32 %v294_v35, %v264_v22  ;;  %v297_v37 = vmul.f32 %v294_v35, %v265_v23  ;;  %p627_p0 = pnand %p626_p8, %p988_p12 }
  0xf4   : > { %v314_v33 = vmul.f32 %v312_v30, %v308_v28  ;;  %v315_v34 = vmul.f32 %v312_v30, %v309_v29  ;;  %v321_v38 = vstv %s506_s21  ;;  %s508_s27 = spop %507  ;;  %s629_s7 = sshll.u32 %s732_s8, 4  ;;  %s630_s7 = int_to_ptr.vmem [resolvable:$false] %s629_s7 }
  0xf5   : > { %v323_v39 = vmul.f32 %v321_v38, %v308_v28  ;;  %v324_v40 = vmul.f32 %v321_v38, %v309_v29  ;;  %v338_v41 = vstv %s508_s27  ;;  %p628_p11 = pneg %p627_p0  ;;  %s631_s18 = scalar_lea.vmem %s630_s7, 512 }
  0xf6   : > { %285 = vrot.lane.b32.xlu1 %v280_v32, %s729_s24  ;;  %283 = vrot.lane.b32.xlu0 %v279_v31, %s729_s24  ;;  %v340_v42 = vmul.f32 %v338_v41, %v308_v28  ;;  %v341_v43 = vmul.f32 %v338_v41, %v309_v29  ;;  %p632_p13 = scmp.lt.s32.totalorder %s920_s26, %s630_s7  ;;  %p633_p1 = scmp.lt.s32.totalorder %s631_s18, %s625_s6 }
  0xf8   : > { %p634_p3 = por %p633_p1, %p632_p13 }
  0xfa   : > { %302 = vrot.lane.b32.xlu1 %v297_v37, %s730_s17  ;;  %300 = vrot.lane.b32.xlu0 %v296_v36, %s730_s17  ;;  %p635_p5 = pnand %p634_p3, %p628_p11 }
  0xfe   : > { %329 = vrot.lane.b32.xlu1 %v324_v40, %s729_s24  ;;  %327 = vrot.lane.b32.xlu0 %v323_v39, %s729_s24  ;;  %s487_s24 = sshll.u32 %s711_s13, 3 }
 0x102   : > { %346 = vrot.lane.b32.xlu1 %v341_v43, %s730_s17  ;;  %344 = vrot.lane.b32.xlu0 %v340_v42, %s730_s17  ;;  %s368_s17 = sadd.s32 %s487_s24, %s486_s29 }
 0x103   : > { %s488_s3 = sshll.u32 %s368_s17, 7 }
 0x104   : > { %s925_s23 = scalar_lea.hbm %s981_s2, %s488_s3 }
 0x160   : > { %v242_v45 = vpop.permute.xlu1 %241  ;;  %v240_v46 = vpop.permute.xlu0 %239 }
 0x161   : > { %v246_v49 = vadd.f32 %v242_v45, %v227_v48  ;;  %v245_v50 = vadd.f32 %v240_v46, %v226_v47 }
 0x164   : > { %v259_v51 = vpop.permute.xlu1 %258  ;;  %v257_v52 = vpop.permute.xlu0 %256 }
 0x165   : > { %v263_v53 = vadd.f32 %v259_v51, %v246_v49  ;;  %v262_v54 = vadd.f32 %v257_v52, %v245_v50 }
 0x167   : > { %v273_v55 = vadd.f32 %v271_v26, %v263_v53  ;;  %v272_v56 = vadd.f32 %v270_v25, %v262_v54 }
 0x168   : > { %v286_v57 = vpop.permute.xlu1 %285  ;;  %v284_v58 = vpop.permute.xlu0 %283 }
 0x169   : > { %v290_v59 = vadd.f32 %v286_v57, %v273_v55  ;;  %v289_v60 = vadd.f32 %v284_v58, %v272_v56 }
 0x16c   : > { %v303_v61 = vpop.permute.xlu1 %302  ;;  %v301_v62 = vpop.permute.xlu0 %300 }
 0x16d   : > { %v307_v63 = vadd.f32 %v303_v61, %v290_v59  ;;  %v306_v0 = vadd.f32 %v301_v62, %v289_v60 }
 0x16f   : > { %v317_v1 = vadd.f32 %v315_v34, %v307_v63  ;;  %v316_v2 = vadd.f32 %v314_v33, %v306_v0 }
 0x170   : > { %v330_v3 = vpop.permute.xlu1 %329  ;;  %v328_v4 = vpop.permute.xlu0 %327 }
 0x171   : > { %v334_v5 = vadd.f32 %v330_v3, %v317_v1  ;;  %v333_v6 = vadd.f32 %v328_v4, %v316_v2 }
 0x174   : > { %v347_v7 = vpop.permute.xlu1 %346  ;;  %v345_v8 = vpop.permute.xlu0 %344 }
 0x175   : > { %v351_v9 = vadd.f32 %v347_v7, %v334_v5  ;;  %v350_v10 = vadd.f32 %v345_v8, %v333_v6 }
 0x177   : > { %354 = vst.msk [vmem:[%s192_s22 + $0x8] sm:$0xff] %vm352_vm4, %v351_v9  ;;  %353 = vst.msk [vmem:[%s192_s22] sm:$0xff] %vm352_vm4, %v350_v10 }
 0x178   : > { %638 = shalt.err (!%p635_p5)
}
 0x179   : > { %s639_s21 = scalar_lea.hbm %s925_s23, 256  ;;  %s643_s24 = scalar_lea.hbm %s981_s2, 2048 }
 0x17a   : > { %p640_p6 = scmp.ne.s32.totalorder %s925_s23, %s639_s21  ;;  %p644_p4 = scmp.lt.u32.totalorder %s925_s23, %s981_s2 }
 0x17b   : > { %p645_p10 = scmp.lt.u32.totalorder %s643_s24, %s639_s21  ;;  %p647_p8 = scmp.lt.u32.totalorder %s639_s21, %s925_s23 }
 0x17c   : > { %p641_p7 = pnand %p640_p6, %p988_p12 }
 0x17d   : > { %p646_p9 = por %p645_p10, %p644_p4 }
 0x17e   : > { %p642_p2 = pneg %p641_p7 }
 0x17f   : > { %p648_p0 = por %p647_p8, %p646_p9 }
 0x181   : > { %p649_p11 = pnand %p648_p0, %p642_p2 }
 0x183   : > { %652 = shalt.err (!%p649_p11)
}
 0x184   : > { %s733_s3 = smov 128   ;;  %s734_s12 = smov 8  }
 0x185   : > { %511 = dma.vmem_to_hbm [thread:$0]  (%p988_p12), %s920_s26, 256, %s925_s23, %s356_s5, %s733_s3, %s733_s3, %s734_s12  }
 0x186 PF: > { %p522_p13 = scmp.ge.s32.totalorder %s723_s16, 2  ;;  %s386_s13 = sand.u32 1, %s695_s9  }
 0x187   : > { %p989_p1 = scmp.ne.s32.totalorder %s986_s28, 0  ;;  %s387_s6 = scalar_lea.sflag [#allocation5], %s386_s13 }
 0x189   : > { %p518_p3 = pnand %p522_p13, %p989_p1 }
 0x18b   : > { %690 = dma.done.wait (!%p518_p3), %s387_s6, 256  }
 0x18c   : > { %692 = vsyncadd (!%p518_p3), %s387_s6, 4294967040  ;;  %s18_s16 = sadd.s32 1, %s723_s16   ;;  %s990_s9 = smov %s699_s10 }
 0x18d   : > { %p15_p5 = scmp.ge.s32.totalorder %s18_s16, 10   ;;  %s991_s10 = smov %s703_s11 }
 0x18e   : > { %s992_s11 = smov %s828_s30  ;;  %s993_s12 = smov %s715_s14 }
 0x18f   : > { %s994_s13 = smov %s719_s15  ;;  %s995_s14 = smov %s998_s19 }
 0x190   : > { %s996_s15 = smov %s1002_s20  ;;  %17 = sbr.rel (!%p15_p5) target bundleno = 7 (0x7), region = 76 }
 0x197   :  { %392 = vsyncpa [#allocation4], 1 }
 0x198   :  { %394 = vsyncpa [#allocation4 + $0x1], 1 }
 0x199   :  { %395 = vsyncpa [#allocation5], 1 }
 0x19a   :  { %397 = vsyncpa [#allocation5 + $0x1], 1 }

</bundles_post_ra>
